<compile_context>
chip_gen: v6e
topology: v6e:2x2x1
jax: 0.10.0
libtpu: 0.0.40
codegen_flags: <defaults>
</compile_context>

<pallas_src>
import functools
import math

import jax
import jax.numpy as jnp
from jax.experimental import pallas as pl
from jax.experimental.pallas import tpu as pltpu

EPS = 1e-07


def _contrast_loss_kernel(x_ref, o_ref, acc_all_ref, acc_pos_ref, *,
                          c, bsz, tile_b, tiles_per_core):
    """Processes one (tile_b, n_cols) batch tile per grid step.

    grid = (num_cores, tiles_per_core); axis 0 is "parallel" (megacore split),
    axis 1 is the sequential accumulation axis.
    """
    core = pl.program_id(0)
    it = pl.program_id(1)

    @pl.when(it == 0)
    def _init():
        acc_all_ref[...] = jnp.zeros_like(acc_all_ref)
        acc_pos_ref[...] = jnp.zeros_like(acc_pos_ref)

    x = x_ref[...].astype(jnp.float32)                    # (tile_b, n_cols)

    # Mask rows outside the real batch: last-tile padding, and tiles that only
    # exist because cdiv(num_tiles, num_cores) over-covers the batch.
    tile_idx = core * tiles_per_core + it                 # unclamped logical tile
    row = tile_idx * tile_b + jax.lax.broadcasted_iota(
        jnp.int32, (tile_b, 1), 0)
    valid = row < bsz                                     # (tile_b, 1)

    # Partial = -sum(log(x + c)) over the whole tile  +  sum(log(x_pos)).
    neg_log_den = -jnp.log(x + c)                         # one EUP log / element
    acc_all_ref[...] += jnp.where(valid, neg_log_den, 0.0)
    log_pos = jnp.log(x[:, :1])                           # (tile_b, 1)
    acc_pos_ref[...] += jnp.where(valid, log_pos, 0.0)

    @pl.when(it == pl.num_programs(1) - 1)
    def _finalize():
        partial = jnp.sum(acc_all_ref[...]) + jnp.sum(acc_pos_ref[...])
        ri = jax.lax.broadcasted_iota(jnp.int32, o_ref.shape, 0)
        ci = jax.lax.broadcasted_iota(jnp.int32, o_ref.shape, 1)
        o_ref[...] = jnp.where((ri == 0) & (ci == 0), partial, 0.0)


def _choose_tile_b(bsz, n_cols, itemsize, target_bytes=2 * 1024 * 1024):
    """Rows per tile: ~target_bytes of input per pipeline buffer, multiple of 8."""
    rows = (target_bytes // max(1, n_cols * itemsize)) // 8 * 8
    rows = max(8, int(rows))
    return bsz if rows >= bsz else rows


def contrast_loss(x, n_data, *, tile_b=None):
    """Pallas forward of ContrastLoss.  x: (bsz, K+1, 1) or (bsz, K+1)."""
    if x.ndim == 3:
        assert x.shape[-1] == 1
        x2d = x[..., 0]
    else:
        x2d = x
    bsz, n_cols = x2d.shape
    m = n_cols - 1
    pn = 1.0 / float(n_data)
    c = m * pn + EPS

    itemsize = jnp.dtype(x2d.dtype).itemsize
    if tile_b is None:
        tile_b = _choose_tile_b(bsz, n_cols, itemsize)
    tile_b = int(min(tile_b, bsz))
    if tile_b < bsz:
        tile_b = max(8, (tile_b // 8) * 8)     # (8,128) rule on second-minor dim

    num_tiles = -(-bsz // tile_b)
    num_cores = 2 if num_tiles >= 2 else 1     # v7x: 2 TCs; no-op cost elsewhere
    tiles_per_core = -(-num_tiles // num_cores)

    kernel = functools.partial(
        _contrast_loss_kernel, c=c, bsz=bsz, tile_b=tile_b,
        tiles_per_core=tiles_per_core)

    def in_map(cidx, i):
        # Clamp so over-covering tiles simply re-read the last real block;
        # their contribution is masked out inside the kernel.
        return (jnp.minimum(cidx * tiles_per_core + i, num_tiles - 1), 0)

    partials = pl.pallas_call(
        kernel,
        out_shape=jax.ShapeDtypeStruct((num_cores * 8, 128), jnp.float32),
        grid_spec=pltpu.PrefetchScalarGridSpec(
            num_scalar_prefetch=0,
            grid=(num_cores, tiles_per_core),
            in_specs=[pl.BlockSpec((tile_b, n_cols), in_map)],
            out_specs=pl.BlockSpec((8, 128), lambda cidx, i: (cidx, 0)),
            scratch_shapes=[pltpu.VMEM((tile_b, n_cols), jnp.float32),
                            pltpu.VMEM((tile_b, 1), jnp.float32)]),
        compiler_params=pltpu.CompilerParams(
            dimension_semantics=("parallel", "arbitrary")),
    )(x2d)

    # bsz*m*log(m*Pn) is a compile-time constant (numerators of log_D0).
    const = float(bsz) * float(m) * math.log(m * pn) if m > 0 else 0.0
    total = jnp.sum(partials) + jnp.float32(const)
    loss = -total / jnp.float32(bsz)
    return jnp.reshape(loss, (1,))


def _reference(x, n_data):
    # Pure-JAX reference mirroring the PyTorch forward.
    x = x.astype(jnp.float32)
    if x.ndim == 3:
        x = x[..., 0]
    bsz, n_cols = x.shape
    m = n_cols - 1
    pn = 1.0 / float(n_data)
    c = m * pn + EPS
    p_pos = x[:, 0]
    log_d1 = jnp.log(p_pos / (p_pos + c))
    p_neg = x[:, 1:]
    log_d0 = jnp.log((m * pn) / (p_neg + c))
    return jnp.reshape(-(jnp.sum(log_d1) + jnp.sum(log_d0)) / bsz, (1,))


if __name__ == "__main__":
    key = jax.random.PRNGKey(0)
    k1, k2 = jax.random.split(key)
    n_data = 128

    # Case 1: tiny single-tile case (bsz=8, 1 positive + 7 negatives), f32.
    x1 = jax.random.uniform(k1, (8, 8, 1), jnp.float32, minval=1e-3, maxval=1.0)
    out1 = contrast_loss(x1, n_data)
    jax.block_until_ready(out1)
    ref1 = _reference(x1, n_data)
    assert out1.shape == (1,)
    assert jnp.allclose(out1, ref1, rtol=1e-4, atol=1e-4), (out1, ref1)

    # Case 2: multi-tile + dual-"core" grid + masked padded/over-covering tiles
    #         (bsz=40, tile_b=16 -> 3 real tiles on a (2, 2) grid).
    x2 = jax.random.uniform(k2, (40, 16, 1), jnp.float32, minval=1e-3, maxval=1.0)
    out2 = contrast_loss(x2, n_data, tile_b=16)
    jax.block_until_ready(out2)
    ref2 = _reference(x2, n_data)
    assert jnp.allclose(out2, ref2, rtol=1e-4, atol=1e-4), (out2, ref2)

    # Case 3: bf16 input streamed narrow, upcast to f32 inside the kernel.
    x3 = x2.astype(jnp.bfloat16)
    out3 = contrast_loss(x3, n_data, tile_b=16)
    jax.block_until_ready(out3)
    ref3 = _reference(x3, n_data)
    assert jnp.allclose(out3, ref3, rtol=1e-4, atol=1e-4), (out3, ref3)

    print("KERNEL_OK")
</pallas_src>

<mosaic_0001>
module attributes {stable_mosaic.version = 11 : i64} {
  func.func @_contrast_loss_kernel(%arg0: i32, %arg1: i32, %arg2: memref<8x8xf32, #tpu.memory_space<vmem>>, %arg3: memref<8x128xf32, #tpu.memory_space<vmem>>, %arg4: memref<8x8xf32, #tpu.memory_space<vmem>>, %arg5: memref<8x1xf32, #tpu.memory_space<vmem>>) attributes {dimension_semantics = [#tpu.dimension_semantics<parallel>, #tpu.dimension_semantics<arbitrary>], iteration_bounds = array<i64: 1, 1>, scalar_prefetch = 0 : i64, scratch_operands = 2 : i64, tpu.core_type = #tpu.core_type<tc>, window_params = [{transform_indices = @transform_0, window_bounds = array<i64: 8, 8>}, {transform_indices = @transform_1, window_bounds = array<i64: 8, 128>}]} {
    %c0_i32 = arith.constant 0 : i32
    %0 = arith.cmpi eq, %arg1, %c0_i32 : i32
    %1 = arith.extui %0 : i1 to i32
    %c0_i32_0 = arith.constant 0 : i32
    %2 = arith.cmpi ne, %1, %c0_i32_0 : i32
    scf.if %2 {
      %cst_16 = arith.constant 0.000000e+00 : f32
      %34 = vector.broadcast %cst_16 : f32 to vector<8x8xf32>
      %c0_17 = arith.constant 0 : index
      %c0_18 = arith.constant 0 : index
      %35 = vector.load %arg4[%c0_17, %c0_18] : memref<8x8xf32, #tpu.memory_space<vmem>>, vector<8x8xf32>
      tpu.vector_store %arg4[%c0_17, %c0_18], %34 {strides = array<i32>} : memref<8x8xf32, #tpu.memory_space<vmem>>, vector<8x8xf32>,
      %cst_19 = arith.constant 0.000000e+00 : f32
      %36 = vector.broadcast %cst_19 : f32 to vector<8x1xf32>
      %c0_20 = arith.constant 0 : index
      %c0_21 = arith.constant 0 : index
      %37 = vector.load %arg5[%c0_20, %c0_21] : memref<8x1xf32, #tpu.memory_space<vmem>>, vector<8x1xf32>
      tpu.vector_store %arg5[%c0_20, %c0_21], %36 {strides = array<i32>} : memref<8x1xf32, #tpu.memory_space<vmem>>, vector<8x1xf32>,
    } else {
    }
    %c0 = arith.constant 0 : index
    %c0_1 = arith.constant 0 : index
    %3 = vector.load %arg2[%c0, %c0_1] : memref<8x8xf32, #tpu.memory_space<vmem>>, vector<8x8xf32>
    %c1_i32 = arith.constant 1 : i32
    %4 = arith.muli %arg0, %c1_i32 : i32
    %5 = arith.addi %4, %arg1 : i32
    %c8_i32 = arith.constant 8 : i32
    %6 = arith.muli %5, %c8_i32 : i32
    %7 = tpu.iota {dimensions = array<i32: 0>} : vector<8x1xi32>
    %8 = vector.broadcast %6 : i32 to vector<8x1xi32>
    %9 = arith.addi %8, %7 : vector<8x1xi32>
    %c8_i32_2 = arith.constant 8 : i32
    %10 = vector.broadcast %c8_i32_2 : i32 to vector<8x1xi32>
    %11 = arith.cmpi slt, %9, %10 : vector<8x1xi32>
    %cst = arith.constant 5.468760e-02 : f32
    %12 = vector.broadcast %cst : f32 to vector<8x8xf32>
    %13 = arith.addf %3, %12 : vector<8x8xf32>
    %14 = math.log %13 : vector<8x8xf32>
    %cst_3 = arith.constant 0.000000e+00 : f32
    %15 = vector.broadcast %cst_3 : f32 to vector<8x8xf32>
    %16 = arith.subf %15, %14 : vector<8x8xf32>
    %c0_4 = arith.constant 0 : index
    %c0_5 = arith.constant 0 : index
    %17 = vector.load %arg4[%c0_4, %c0_5] : memref<8x8xf32, #tpu.memory_space<vmem>>, vector<8x8xf32>
    %cst_6 = arith.constant 0.000000e+00 : f32
    %18 = vector.shape_cast %11 : vector<8x1xi1> to vector<8x1xi1>
    %19 = vector.broadcast %18 : vector<8x1xi1> to vector<8x8xi1>
    %20 = vector.broadcast %cst_6 : f32 to vector<8x8xf32>
    %21 = arith.select %19, %16, %20 : vector<8x8xi1>, vector<8x8xf32>
    %22 = arith.addf %17, %21 : vector<8x8xf32>
    %c0_7 = arith.constant 0 : index
    %c0_8 = arith.constant 0 : index
    %23 = vector.load %arg4[%c0_7, %c0_8] : memref<8x8xf32, #tpu.memory_space<vmem>>, vector<8x8xf32>
    tpu.vector_store %arg4[%c0_7, %c0_8], %22 {strides = array<i32>} : memref<8x8xf32, #tpu.memory_space<vmem>>, vector<8x8xf32>,
    %24 = vector.extract_strided_slice %3 {offsets = [0, 0], sizes = [8, 1], strides = [1, 1]} : vector<8x8xf32> to vector<8x1xf32>
    %25 = math.log %24 : vector<8x1xf32>
    %c0_9 = arith.constant 0 : index
    %c0_10 = arith.constant 0 : index
    %26 = vector.load %arg5[%c0_9, %c0_10] : memref<8x1xf32, #tpu.memory_space<vmem>>, vector<8x1xf32>
    %cst_11 = arith.constant 0.000000e+00 : f32
    %27 = vector.broadcast %cst_11 : f32 to vector<8x1xf32>
    %28 = arith.select %11, %25, %27 : vector<8x1xi1>, vector<8x1xf32>
    %29 = arith.addf %26, %28 : vector<8x1xf32>
    %c0_12 = arith.constant 0 : index
    %c0_13 = arith.constant 0 : index
    %30 = vector.load %arg5[%c0_12, %c0_13] : memref<8x1xf32, #tpu.memory_space<vmem>>, vector<8x1xf32>
    tpu.vector_store %arg5[%c0_12, %c0_13], %29 {strides = array<i32>} : memref<8x1xf32, #tpu.memory_space<vmem>>, vector<8x1xf32>,
    %c0_i32_14 = arith.constant 0 : i32
    %31 = arith.cmpi eq, %arg1, %c0_i32_14 : i32
    %32 = arith.extui %31 : i1 to i32
    %c0_i32_15 = arith.constant 0 : i32
    %33 = arith.cmpi ne, %32, %c0_i32_15 : i32
    scf.if %33 {
      %c0_16 = arith.constant 0 : index
      %c0_17 = arith.constant 0 : index
      %34 = vector.load %arg4[%c0_16, %c0_17] : memref<8x8xf32, #tpu.memory_space<vmem>>, vector<8x8xf32>
      %35 = vector.shape_cast %34 : vector<8x8xf32> to vector<1x8x8xf32>
      %cst_18 = arith.constant dense<0.000000e+00> : vector<1xf32>
      %36 = vector.multi_reduction <add>, %35, %cst_18 [1, 2] : vector<1x8x8xf32> to vector<1xf32>
      %37 = vector.shape_cast %36 : vector<1xf32> to vector<1x1x1xf32>
      %38 = vector.extract %37[0, 0, 0] : f32 from vector<1x1x1xf32>
      %c0_19 = arith.constant 0 : index
      %c0_20 = arith.constant 0 : index
      %39 = vector.load %arg5[%c0_19, %c0_20] : memref<8x1xf32, #tpu.memory_space<vmem>>, vector<8x1xf32>
      %40 = vector.shape_cast %39 : vector<8x1xf32> to vector<1x8x1xf32>
      %cst_21 = arith.constant dense<0.000000e+00> : vector<1xf32>
      %41 = vector.multi_reduction <add>, %40, %cst_21 [1, 2] : vector<1x8x1xf32> to vector<1xf32>
      %42 = vector.shape_cast %41 : vector<1xf32> to vector<1x1x1xf32>
      %43 = vector.extract %42[0, 0, 0] : f32 from vector<1x1x1xf32>
      %44 = arith.addf %38, %43 : f32
      %45 = tpu.iota {dimensions = array<i32: 0>} : vector<8x128xi32>
      %46 = tpu.iota {dimensions = array<i32: 1>} : vector<8x128xi32>
      %c0_i32_22 = arith.constant 0 : i32
      %47 = vector.broadcast %c0_i32_22 : i32 to vector<8x128xi32>
      %48 = arith.cmpi eq, %45, %47 : vector<8x128xi32>
      %c0_i32_23 = arith.constant 0 : i32
      %49 = vector.broadcast %c0_i32_23 : i32 to vector<8x128xi32>
      %50 = arith.cmpi eq, %46, %49 : vector<8x128xi32>
      %51 = arith.andi %48, %50 : vector<8x128xi1>
      %cst_24 = arith.constant 0.000000e+00 : f32
      %52 = vector.broadcast %44 : f32 to vector<8x128xf32>
      %53 = vector.broadcast %cst_24 : f32 to vector<8x128xf32>
      %54 = arith.select %51, %52, %53 : vector<8x128xi1>, vector<8x128xf32>
      %c0_25 = arith.constant 0 : index
      %c0_26 = arith.constant 0 : index
      %55 = vector.load %arg3[%c0_25, %c0_26] : memref<8x128xf32, #tpu.memory_space<vmem>>, vector<8x128xf32>
      tpu.vector_store %arg3[%c0_25, %c0_26], %54 {strides = array<i32>} : memref<8x128xf32, #tpu.memory_space<vmem>>, vector<8x128xf32>,
    } else {
    }
    return
  }
  func.func @transform_0(%arg0: i32, %arg1: i32) -> (i32, i32) {
    %c1_i32 = arith.constant 1 : i32
    %0 = arith.muli %arg0, %c1_i32 : i32
    %1 = arith.addi %0, %arg1 : i32
    %c0_i32 = arith.constant 0 : i32
    %2 = arith.minsi %1, %c0_i32 : i32
    %c0_i32_0 = arith.constant 0 : i32
    %c0_i32_1 = arith.constant 0 : i32
    return %2, %c0_i32_0 : i32, i32
  }
  func.func @transform_1(%arg0: i32, %arg1: i32) -> (i32, i32) {
    %c0_i32 = arith.constant 0 : i32
    %c0_i32_0 = arith.constant 0 : i32
    return %arg0, %c0_i32 : i32, i32
  }
}

</mosaic_0001>

<bundles_post_ra>
// kernel: tpu_custom_call.1
= control target key start
LH: loop header
LB: loop body
LE: loop exit
PB: predicated region body
PF: predicated region fallthrough
CT: control target
= control target key end

     0   :  { %6 = vsyncpa [#allocation5], 0  ;;  %s194_s0 = inlined_call_operand.hbm [shape: f32[8,8], index: 0, kind: input, shape index: {}]   ;;  %s195_s1 = inlined_call_operand.hbm [shape: f32[8,128], index: 1, kind: output, shape index: {}]  }
   0x1   :  { %7 = vsyncpa [#allocation6], 0  ;;  %s169_s6 = smov [#allocation4]  }
   0x2   :  { %s19_s7 = sshll.u32 %s169_s6, 4  ;;  %s20_s7 = int_to_ptr.vmem [resolvable:$true] %s19_s7 }
   0x3   :  { %s133_s8 = scalar_lea.vmem %s20_s7, 128  ;;  %p138_p1 = scmp.lt.s32.totalorder %s20_s7, %s20_s7 }
   0x4   :  { %p134_p0 = scmp.ne.s32.totalorder %s20_s7, %s133_s8  ;;  %p139_p2 = scmp.lt.s32.totalorder %s133_s8, %s133_s8 }
   0x6   :  { %p140_p3 = por %p139_p2, %p138_p1 }
   0x8   :  { %p141_p4 = pnand %p140_p3, %p134_p0 }
   0xa   :  { %144 = shalt.err (!%p141_p4)
}
   0xb   :  { %22 = dma.hbm_to_vmem [thread:$0]  %s194_s0, 128, %s20_s7, [#allocation5]  }
   0xc   :  { %165 = dma.done.wait [#allocation5], 128  }
   0xd   :  { %166 = vsyncadd [#allocation5], 4294967168  ;;  %vm33_vm0 = vcmask 64512   ;;  %vm35_vm1 = vcmask 7168   ;;  %v170_v0 = vmov 0.0   ;;  %v37_v1 = vld [vmem:[#allocation4] sm:$0xff]  ;;  %v40_v30 = vlaneseq }
   0xe   :  { %34 = vst.msk [vmem:[#allocation2] sm:$0xff] %vm33_vm0, %v170_v0  ;;  %v45_v2 = vadd.f32 0.0546876, %v37_v1  ;;  %121 = vlog2.f32 %v37_v1  ;;  %s171_s12 = smov [#allocation7]  }
   0xf   :  { %36 = vst.msk [vmem:[#allocation3] sm:$0xff] %vm35_vm1, %v170_v0  ;;  %v41_v31 = vshrl.u32 %v40_v30, 7  ;;  %v90_v32 = vand.u32 127, %v40_v30  ;;  %s103_s13 = sshll.u32 %s171_s12, 4  ;;  %s104_s13 = int_to_ptr.vmem [resolvable:$true] %s103_s13 }
  0x10   :  { %123 = vlog2.f32 %v45_v2  ;;  %s145_s15 = scalar_lea.vmem %s104_s13, 128  ;;  %p150_p6 = scmp.lt.s32.totalorder %s104_s13, %s104_s13 }
  0x11   :  { %vm91_vm2 = vcmp.eq.s32.totalorder %v41_v31, 0  ;;  %vm92_vm3 = vcmp.eq.s32.totalorder %v90_v32, 0  ;;  %p146_p5 = scmp.ne.s32.totalorder %s104_s13, %s145_s15  ;;  %p151_p7 = scmp.lt.s32.totalorder %s145_s15, %s145_s15 }
  0x12   :  { %vm93_vm4 = vmand %vm91_vm2, %vm92_vm3 }
  0x13   :  { %p152_p8 = por %p151_p7, %p150_p6 }
  0x15   :  { %v49_v9 = vld [vmem:[#allocation2] sm:$0xff]  ;;  %p153_p9 = pnand %p152_p8, %p146_p5 }
  0x16   :  { %v58_v4 = vld [vmem:[#allocation3] sm:$0xff] }
  0x1b   :  { %v122_v3 = vpop.eup %121 }
  0x1c   :  { %v57_v5 = vmul.f32 0.6931472, %v122_v3 }
  0x1d   :  { %v124_v6 = vpop.eup %123 }
  0x1e   :  { %v47_v7 = vmul.f32 0.6931472, %v124_v6  ;;  %v60_v8 = vadd.f32 %v58_v4, %v57_v5 }
  0x20   :  { %v48_v10 = vsub.f32 0.0, %v47_v7  ;;  %62 = vst.msk [vmem:[#allocation3] sm:$0xff] %vm35_vm1, %v60_v8 }
  0x22   :  { %v53_v11 = vadd.f32 %v49_v9, %v48_v10 }
  0x24   :  { %55 = vst.msk [vmem:[#allocation2] sm:$0xff] %vm33_vm0, %v53_v11 }
  0x27   :  { %v77_v13 = vld [vmem:[#allocation3] sm:$0xff] }
  0x28   :  { %v78_v15 = vsel %vm35_vm1, %v77_v13, 0.0 }
  0x2b   :  { %v66_v12 = vld [vmem:[#allocation2] sm:$0xff] }
  0x2c   :  { %v67_v14 = vsel %vm33_vm0, %v66_v12, 0.0 }
  0x2d   :  { %68 = vadd.xlane.f32.xlu0 %v67_v14 }
  0x31   :  { %79 = vadd.xlane.f32.xlu0 %v78_v15 }
  0xb6   :  { %v69_v16 = vpop.xlane.xlu0 %68 }
  0xb7   :  { %v70_v17 = vrot.slane %v69_v16, 4 }
  0xb9   :  { %v71_v18 = vadd.f32 %v70_v17, %v69_v16 }
  0xba   :  { %v80_v19 = vpop.xlane.xlu0 %79 }
  0xbb   :  { %v72_v20 = vrot.slane %v71_v18, 2  ;;  %v81_v21 = vrot.slane %v80_v19, 4 }
  0xbd   :  { %v82_v22 = vadd.f32 %v81_v21, %v80_v19  ;;  %v73_v23 = vadd.f32 %v72_v20, %v71_v18 }
  0xbf   :  { %v83_v24 = vrot.slane %v82_v22, 2  ;;  %v74_v25 = vrot.slane %v73_v23, 1 }
  0xc1   :  { %v84_v26 = vadd.f32 %v83_v24, %v82_v22  ;;  %v75_v27 = vadd.f32 %v74_v25, %v73_v23 }
  0xc3   :  { %114 = vpush %v75_v27  ;;  %v85_v28 = vrot.slane %v84_v26, 1 }
  0xc5   :  { %v86_v29 = vadd.f32 %v85_v28, %v84_v26 }
  0xc7   :  { %116 = vpush %v86_v29 }
  0xf4   :  { %s115_s0 = spop %114 }
  0xf8   :  { %s117_s11 = spop %116 }
  0xf9   :  { %s88_s14 = sadd.f32 %s117_s11, %s115_s0 }
  0xfb   :  { %v94_v33 = vstv %s88_s14 }
  0xfc   :  { %v95_v34 = vsel %vm93_vm4, %v94_v33, 0.0 }
  0xfd   :  { %96 = vst [vmem:[#allocation7] sm:$0xff] %v95_v34 }
  0xfe   :  { %156 = shalt.err (!%p153_p9)
}
  0xff   :  { %106 = dma.vmem_to_hbm [thread:$0]  %s104_s13, 128, %s195_s1, [#allocation6]  }
 0x100   :  { %167 = dma.done.wait [#allocation6], 128  }
 0x101   :  { %168 = vsyncadd [#allocation6], 4294967168 }
 0x102   :  { %110 = vsyncpa [#allocation5], 1 }
 0x103   :  { %111 = vsyncpa [#allocation6], 1 }

</bundles_post_ra>
